<compile_context>
chip_gen: v7x
topology: tpu7x:2x2x1
jax: 0.10.0
libtpu: 0.0.40
codegen_flags: <defaults>
</compile_context>

<pallas_src>
import functools

import jax
import jax.numpy as jnp
import numpy as np
from jax.experimental import pallas as pl
from jax.experimental.pallas import tpu as pltpu


def _pair(v):
    return (v, v) if isinstance(v, int) else tuple(v)


def downsample_kernel(x_ref, w_ref, b_ref, gamma_ref, beta_ref, o_ref):
    # x_ref : (Hq, SH, Wq, SW*Cin)   space-to-depth padded input, one sample (bf16)
    # w_ref : (KH, KWg, SW*Cin, 2*Co) fused + regrouped conv weights (bf16)
    # b_ref / gamma_ref / beta_ref : (1, 2*Co)   fused bias / IN affine params (f32)
    # o_ref : (Ho, Wo, Co)
    Hq, SH, Wq, KC = x_ref.shape
    KH, KWg, _, C2 = w_ref.shape
    Ho, Wo, Co = o_ref.shape
    HW = Ho * Wo

    # ---- fused convolution: KH * ceil(KW/SW) lane-dense matmuls, f32 accumulation
    acc = jnp.zeros((HW, C2), jnp.float32)
    for kh in range(KH):                      # static unroll (small tap count)
        qh, ph = divmod(kh, SH)
        for qw in range(KWg):
            patch = x_ref[pl.ds(qh, Ho), ph, pl.ds(qw, Wo), :]   # (Ho, Wo, SW*Cin)
            acc = acc + jnp.dot(patch.reshape(HW, KC), w_ref[kh, qw],
                                preferred_element_type=jnp.float32)

    y = acc + b_ref[...]                                          # (HW, 2*Co)

    # ---- InstanceNorm2d (affine=True): per-(sample, channel) stats over H*W
    mean = jnp.mean(y, axis=0, keepdims=True)
    var = jnp.mean(jnp.square(y - mean), axis=0, keepdims=True)
    y = (y - mean) * jax.lax.rsqrt(var + 1e-5)
    y = y * gamma_ref[...] + beta_ref[...]

    # ---- GLU gate: first Co channels = conv branch, last Co channels = gate branch
    a = y[:, :Co]
    g = y[:, Co:]
    o_ref[...] = (a * jax.nn.sigmoid(g)).reshape(Ho, Wo, Co).astype(o_ref.dtype)


def downsample_forward(x_nchw, params, *, kernel_size, stride, padding,
                       matmul_dtype=jnp.bfloat16):
    """x: (N, Cin, H, W) NCHW (PyTorch layout).  Returns (N, Co, Ho, Wo)."""
    KH, KW = _pair(kernel_size)
    SH, SW = _pair(stride)
    PH, PW = _pair(padding)

    N, Cin, H, W = x_nchw.shape
    Co = params["w"].shape[0]
    C2 = 2 * Co

    Ho = (H + 2 * PH - KH) // SH + 1
    Wo = (W + 2 * PW - KW) // SW + 1
    KWg = -(-KW // SW)                       # ceil(KW / SW): W-tap groups
    Hq = Ho + (KH - 1) // SH                 # space-to-depth H extent
    Wq = Wo + KWg - 1                        # space-to-depth W extent
    Hp, Wp = Hq * SH, Wq * SW                # padded spatial extents
    KC = SW * Cin                            # matmul K per tap group

    # ---- input: NCHW -> padded NHWC -> space-to-depth (N, Hq, SH, Wq, SW*Cin)
    x = jnp.transpose(x_nchw, (0, 2, 3, 1)).astype(matmul_dtype)
    pad_b = max(0, Hp - H - PH)
    pad_r = max(0, Wp - W - PW)
    x = jnp.pad(x, ((0, 0), (PH, pad_b), (PW, pad_r), (0, 0)))[:, :Hp, :Wp, :]
    xv = x.reshape(N, Hq, SH, Wq, KC)        # free reshape (row-major contiguous)

    # ---- fuse conv + gate weights, fold W-stride phases into the K dimension
    w_f = jnp.concatenate([params["w"], params["w_gate"]], axis=0)   # (2Co,Cin,KH,KW)
    w_f = jnp.pad(w_f, ((0, 0), (0, 0), (0, 0), (0, KWg * SW - KW))) # zero taps
    w_re = w_f.reshape(C2, Cin, KH, KWg, SW)
    w_re = jnp.transpose(w_re, (2, 3, 4, 1, 0)).reshape(KH, KWg, KC, C2)
    w_re = w_re.astype(matmul_dtype)

    b_f = jnp.concatenate([params["b"], params["b_gate"]]).reshape(1, C2)
    gamma_f = jnp.concatenate([params["gamma"], params["gamma_gate"]]).reshape(1, C2)
    beta_f = jnp.concatenate([params["beta"], params["beta_gate"]]).reshape(1, C2)
    b_f = b_f.astype(jnp.float32)
    gamma_f = gamma_f.astype(jnp.float32)
    beta_f = beta_f.astype(jnp.float32)

    itemsize = jnp.dtype(matmul_dtype).itemsize
    cost = pl.CostEstimate(
        flops=2 * N * Ho * Wo * KH * KWg * KC * C2,
        transcendentals=N * Ho * Wo * Co + N * C2,
        bytes_accessed=(N * Hq * SH * Wq * KC * itemsize      # input
                        + KH * KWg * KC * C2 * itemsize        # weights
                        + 3 * C2 * 4                           # bias / affine
                        + N * Ho * Wo * Co * 4),               # output
    )

    out_nhwc = pl.pallas_call(
        downsample_kernel,
        grid=(N,),
        in_specs=[
            pl.BlockSpec((None, Hq, SH, Wq, KC), lambda n: (n, 0, 0, 0, 0)),
            pl.BlockSpec((KH, KWg, KC, C2), lambda n: (0, 0, 0, 0)),
            pl.BlockSpec((1, C2), lambda n: (0, 0)),
            pl.BlockSpec((1, C2), lambda n: (0, 0)),
            pl.BlockSpec((1, C2), lambda n: (0, 0)),
        ],
        out_specs=pl.BlockSpec((None, Ho, Wo, Co), lambda n: (n, 0, 0, 0)),
        out_shape=jax.ShapeDtypeStruct((N, Ho, Wo, Co), jnp.float32),
        compiler_params=pltpu.CompilerParams(
            dimension_semantics=("parallel",),          # shard batch across v7x TCs
            vmem_limit_bytes=64 * 1024 * 1024,          # cap only; per-step use is tiny
        ),
        cost_estimate=cost,
    )(xv, w_re, b_f, gamma_f, beta_f)

    return jnp.transpose(out_nhwc, (0, 3, 1, 2))        # back to PyTorch NCHW


# ---------------- pure-JAX reference (independent formulation, f32) ----------------
def downsample_reference(x, params, *, kernel_size, stride, padding):
    KH, KW = _pair(kernel_size)
    SH, SW = _pair(stride)
    PH, PW = _pair(padding)

    def branch(w, b, gamma, beta):
        y = jax.lax.conv_general_dilated(
            x, w, window_strides=(SH, SW), padding=[(PH, PH), (PW, PW)],
            dimension_numbers=("NCHW", "OIHW", "NCHW"))
        y = y + b[None, :, None, None]
        mean = jnp.mean(y, axis=(2, 3), keepdims=True)
        var = jnp.mean(jnp.square(y - mean), axis=(2, 3), keepdims=True)
        y = (y - mean) * jax.lax.rsqrt(var + 1e-5)
        return y * gamma[None, :, None, None] + beta[None, :, None, None]

    a = branch(params["w"], params["b"], params["gamma"], params["beta"])
    g = branch(params["w_gate"], params["b_gate"],
               params["gamma_gate"], params["beta_gate"])
    return a * jax.nn.sigmoid(g)


if __name__ == "__main__":
    N, Cin, Co, H, W = 2, 8, 16, 16, 16
    kernel_size, stride, padding = 3, 2, 1

    key = jax.random.PRNGKey(0)
    ks = jax.random.split(key, 9)
    wscale = 1.0 / np.sqrt(Cin * kernel_size * kernel_size)

    x = jax.random.normal(ks[0], (N, Cin, H, W), jnp.float32)
    params = dict(
        w=wscale * jax.random.normal(ks[1], (Co, Cin, kernel_size, kernel_size), jnp.float32),
        b=0.1 * jax.random.normal(ks[2], (Co,), jnp.float32),
        gamma=1.0 + 0.1 * jax.random.normal(ks[3], (Co,), jnp.float32),
        beta=0.1 * jax.random.normal(ks[4], (Co,), jnp.float32),
        w_gate=wscale * jax.random.normal(ks[5], (Co, Cin, kernel_size, kernel_size), jnp.float32),
        b_gate=0.1 * jax.random.normal(ks[6], (Co,), jnp.float32),
        gamma_gate=1.0 + 0.1 * jax.random.normal(ks[7], (Co,), jnp.float32),
        beta_gate=0.1 * jax.random.normal(ks[8], (Co,), jnp.float32),
    )

    fwd = jax.jit(functools.partial(downsample_forward, kernel_size=kernel_size,
                                    stride=stride, padding=padding))
    out = jax.block_until_ready(fwd(x, params))

    Ho = (H + 2 * padding - kernel_size) // stride + 1
    Wo = (W + 2 * padding - kernel_size) // stride + 1
    assert out.shape == (N, Co, Ho, Wo), out.shape

    ref = downsample_reference(x, params, kernel_size=kernel_size,
                               stride=stride, padding=padding)
    # tolerance covers the bf16 matmul operands (accumulation / norm / gate in f32)
    np.testing.assert_allclose(np.asarray(out), np.asarray(ref), rtol=5e-2, atol=5e-2)
    print("KERNEL_OK")
</pallas_src>

<mosaic_0001>
module attributes {stable_mosaic.version = 11 : i64} {
  func.func @downsample_kernel(%arg0: i32, %arg1: memref<1x9x2x9x16xbf16, #tpu.memory_space<vmem>>, %arg2: memref<3x2x16x32xbf16, #tpu.memory_space<vmem>>, %arg3: memref<1x32xf32, #tpu.memory_space<vmem>>, %arg4: memref<1x32xf32, #tpu.memory_space<vmem>>, %arg5: memref<1x32xf32, #tpu.memory_space<vmem>>, %arg6: memref<1x8x8x16xf32, #tpu.memory_space<vmem>>) attributes {dimension_semantics = [#tpu.dimension_semantics<parallel>], iteration_bounds = array<i64: 2>, scalar_prefetch = 0 : i64, scratch_operands = 0 : i64, tpu.core_type = #tpu.core_type<tc>, window_params = [{transform_indices = @transform_0, window_bounds = array<i64: 1, 9, 2, 9, 16>}, {pipeline_mode = #tpu.pipeline_mode<synchronous>, transform_indices = @transform_1, window_bounds = array<i64: 3, 2, 16, 32>}, {pipeline_mode = #tpu.pipeline_mode<synchronous>, transform_indices = @transform_2, window_bounds = array<i64: 1, 32>}, {pipeline_mode = #tpu.pipeline_mode<synchronous>, transform_indices = @transform_3, window_bounds = array<i64: 1, 32>}, {pipeline_mode = #tpu.pipeline_mode<synchronous>, transform_indices = @transform_4, window_bounds = array<i64: 1, 32>}, {transform_indices = @transform_5, window_bounds = array<i64: 1, 8, 8, 16>}]} {
    %cst = arith.constant 0.000000e+00 : f32
    %0 = vector.broadcast %cst : f32 to vector<64x32xf32>
    %c0 = arith.constant 0 : index
    %c0_0 = arith.constant 0 : index
    %c0_1 = arith.constant 0 : index
    %c0_2 = arith.constant 0 : index
    %c0_3 = arith.constant 0 : index
    %1 = vector.load %arg1[%c0, %c0_0, %c0_1, %c0_2, %c0_3] : memref<1x9x2x9x16xbf16, #tpu.memory_space<vmem>>, vector<1x8x1x8x16xbf16>
    %2 = vector.shape_cast %1 : vector<1x8x1x8x16xbf16> to vector<8x8x16xbf16>
    %3 = vector.shape_cast %2 : vector<8x8x16xbf16> to vector<64x16xbf16>
    %c0_4 = arith.constant 0 : index
    %c0_5 = arith.constant 0 : index
    %c0_6 = arith.constant 0 : index
    %c0_7 = arith.constant 0 : index
    %4 = vector.load %arg2[%c0_4, %c0_5, %c0_6, %c0_7] : memref<3x2x16x32xbf16, #tpu.memory_space<vmem>>, vector<1x1x16x32xbf16>
    %5 = vector.shape_cast %4 : vector<1x1x16x32xbf16> to vector<16x32xbf16>
    %cst_8 = arith.constant dense<0.000000e+00> : vector<64x32xf32>
    %6 = tpu.matmul %3, %5, %cst_8 {dimension_numbers = #tpu.dot_dimension_numbers<[1], [0], [0], [1], [0, 0, 1, 1], [], []>} : vector<64x16xbf16>, vector<16x32xbf16>, vector<64x32xf32> -> vector<64x32xf32>
    %7 = arith.addf %0, %6 : vector<64x32xf32>
    %c0_9 = arith.constant 0 : index
    %c0_10 = arith.constant 0 : index
    %c0_11 = arith.constant 0 : index
    %c1 = arith.constant 1 : index
    %c0_12 = arith.constant 0 : index
    %8 = vector.load %arg1[%c0_9, %c0_10, %c0_11, %c1, %c0_12] : memref<1x9x2x9x16xbf16, #tpu.memory_space<vmem>>, vector<1x8x1x8x16xbf16>
    %9 = vector.shape_cast %8 : vector<1x8x1x8x16xbf16> to vector<8x8x16xbf16>
    %10 = vector.shape_cast %9 : vector<8x8x16xbf16> to vector<64x16xbf16>
    %c0_13 = arith.constant 0 : index
    %c1_14 = arith.constant 1 : index
    %c0_15 = arith.constant 0 : index
    %c0_16 = arith.constant 0 : index
    %11 = vector.load %arg2[%c0_13, %c1_14, %c0_15, %c0_16] : memref<3x2x16x32xbf16, #tpu.memory_space<vmem>>, vector<1x1x16x32xbf16>
    %12 = vector.shape_cast %11 : vector<1x1x16x32xbf16> to vector<16x32xbf16>
    %cst_17 = arith.constant dense<0.000000e+00> : vector<64x32xf32>
    %13 = tpu.matmul %10, %12, %cst_17 {dimension_numbers = #tpu.dot_dimension_numbers<[1], [0], [0], [1], [0, 0, 1, 1], [], []>} : vector<64x16xbf16>, vector<16x32xbf16>, vector<64x32xf32> -> vector<64x32xf32>
    %14 = arith.addf %7, %13 : vector<64x32xf32>
    %c0_18 = arith.constant 0 : index
    %c0_19 = arith.constant 0 : index
    %c1_20 = arith.constant 1 : index
    %c0_21 = arith.constant 0 : index
    %c0_22 = arith.constant 0 : index
    %15 = vector.load %arg1[%c0_18, %c0_19, %c1_20, %c0_21, %c0_22] : memref<1x9x2x9x16xbf16, #tpu.memory_space<vmem>>, vector<1x8x1x8x16xbf16>
    %16 = vector.shape_cast %15 : vector<1x8x1x8x16xbf16> to vector<8x8x16xbf16>
    %17 = vector.shape_cast %16 : vector<8x8x16xbf16> to vector<64x16xbf16>
    %c1_23 = arith.constant 1 : index
    %c0_24 = arith.constant 0 : index
    %c0_25 = arith.constant 0 : index
    %c0_26 = arith.constant 0 : index
    %18 = vector.load %arg2[%c1_23, %c0_24, %c0_25, %c0_26] : memref<3x2x16x32xbf16, #tpu.memory_space<vmem>>, vector<1x1x16x32xbf16>
    %19 = vector.shape_cast %18 : vector<1x1x16x32xbf16> to vector<16x32xbf16>
    %cst_27 = arith.constant dense<0.000000e+00> : vector<64x32xf32>
    %20 = tpu.matmul %17, %19, %cst_27 {dimension_numbers = #tpu.dot_dimension_numbers<[1], [0], [0], [1], [0, 0, 1, 1], [], []>} : vector<64x16xbf16>, vector<16x32xbf16>, vector<64x32xf32> -> vector<64x32xf32>
    %21 = arith.addf %14, %20 : vector<64x32xf32>
    %c0_28 = arith.constant 0 : index
    %c0_29 = arith.constant 0 : index
    %c1_30 = arith.constant 1 : index
    %c1_31 = arith.constant 1 : index
    %c0_32 = arith.constant 0 : index
    %22 = vector.load %arg1[%c0_28, %c0_29, %c1_30, %c1_31, %c0_32] : memref<1x9x2x9x16xbf16, #tpu.memory_space<vmem>>, vector<1x8x1x8x16xbf16>
    %23 = vector.shape_cast %22 : vector<1x8x1x8x16xbf16> to vector<8x8x16xbf16>
    %24 = vector.shape_cast %23 : vector<8x8x16xbf16> to vector<64x16xbf16>
    %c1_33 = arith.constant 1 : index
    %c1_34 = arith.constant 1 : index
    %c0_35 = arith.constant 0 : index
    %c0_36 = arith.constant 0 : index
    %25 = vector.load %arg2[%c1_33, %c1_34, %c0_35, %c0_36] : memref<3x2x16x32xbf16, #tpu.memory_space<vmem>>, vector<1x1x16x32xbf16>
    %26 = vector.shape_cast %25 : vector<1x1x16x32xbf16> to vector<16x32xbf16>
    %cst_37 = arith.constant dense<0.000000e+00> : vector<64x32xf32>
    %27 = tpu.matmul %24, %26, %cst_37 {dimension_numbers = #tpu.dot_dimension_numbers<[1], [0], [0], [1], [0, 0, 1, 1], [], []>} : vector<64x16xbf16>, vector<16x32xbf16>, vector<64x32xf32> -> vector<64x32xf32>
    %28 = arith.addf %21, %27 : vector<64x32xf32>
    %c0_38 = arith.constant 0 : index
    %c1_39 = arith.constant 1 : index
    %c0_40 = arith.constant 0 : index
    %c0_41 = arith.constant 0 : index
    %c0_42 = arith.constant 0 : index
    %29 = vector.load %arg1[%c0_38, %c1_39, %c0_40, %c0_41, %c0_42] : memref<1x9x2x9x16xbf16, #tpu.memory_space<vmem>>, vector<1x8x1x8x16xbf16>
    %30 = vector.shape_cast %29 : vector<1x8x1x8x16xbf16> to vector<8x8x16xbf16>
    %31 = vector.shape_cast %30 : vector<8x8x16xbf16> to vector<64x16xbf16>
    %c2 = arith.constant 2 : index
    %c0_43 = arith.constant 0 : index
    %c0_44 = arith.constant 0 : index
    %c0_45 = arith.constant 0 : index
    %32 = vector.load %arg2[%c2, %c0_43, %c0_44, %c0_45] : memref<3x2x16x32xbf16, #tpu.memory_space<vmem>>, vector<1x1x16x32xbf16>
    %33 = vector.shape_cast %32 : vector<1x1x16x32xbf16> to vector<16x32xbf16>
    %cst_46 = arith.constant dense<0.000000e+00> : vector<64x32xf32>
    %34 = tpu.matmul %31, %33, %cst_46 {dimension_numbers = #tpu.dot_dimension_numbers<[1], [0], [0], [1], [0, 0, 1, 1], [], []>} : vector<64x16xbf16>, vector<16x32xbf16>, vector<64x32xf32> -> vector<64x32xf32>
    %35 = arith.addf %28, %34 : vector<64x32xf32>
    %c0_47 = arith.constant 0 : index
    %c1_48 = arith.constant 1 : index
    %c0_49 = arith.constant 0 : index
    %c1_50 = arith.constant 1 : index
    %c0_51 = arith.constant 0 : index
    %36 = vector.load %arg1[%c0_47, %c1_48, %c0_49, %c1_50, %c0_51] : memref<1x9x2x9x16xbf16, #tpu.memory_space<vmem>>, vector<1x8x1x8x16xbf16>
    %37 = vector.shape_cast %36 : vector<1x8x1x8x16xbf16> to vector<8x8x16xbf16>
    %38 = vector.shape_cast %37 : vector<8x8x16xbf16> to vector<64x16xbf16>
    %c2_52 = arith.constant 2 : index
    %c1_53 = arith.constant 1 : index
    %c0_54 = arith.constant 0 : index
    %c0_55 = arith.constant 0 : index
    %39 = vector.load %arg2[%c2_52, %c1_53, %c0_54, %c0_55] : memref<3x2x16x32xbf16, #tpu.memory_space<vmem>>, vector<1x1x16x32xbf16>
    %40 = vector.shape_cast %39 : vector<1x1x16x32xbf16> to vector<16x32xbf16>
    %cst_56 = arith.constant dense<0.000000e+00> : vector<64x32xf32>
    %41 = tpu.matmul %38, %40, %cst_56 {dimension_numbers = #tpu.dot_dimension_numbers<[1], [0], [0], [1], [0, 0, 1, 1], [], []>} : vector<64x16xbf16>, vector<16x32xbf16>, vector<64x32xf32> -> vector<64x32xf32>
    %42 = arith.addf %35, %41 : vector<64x32xf32>
    %c0_57 = arith.constant 0 : index
    %c0_58 = arith.constant 0 : index
    %43 = vector.load %arg3[%c0_57, %c0_58] : memref<1x32xf32, #tpu.memory_space<vmem>>, vector<1x32xf32>
    %44 = vector.broadcast %43 : vector<1x32xf32> to vector<64x32xf32>
    %45 = arith.addf %42, %44 : vector<64x32xf32>
    %cst_59 = arith.constant dense<0.000000e+00> : vector<32xf32>
    %46 = vector.multi_reduction <add>, %45, %cst_59 [0] : vector<64x32xf32> to vector<32xf32>
    %47 = vector.shape_cast %46 : vector<32xf32> to vector<1x32xf32>
    %cst_60 = arith.constant 6.400000e+01 : f32
    %48 = vector.broadcast %cst_60 : f32 to vector<1x32xf32>
    %49 = arith.divf %47, %48 : vector<1x32xf32>
    %50 = vector.broadcast %49 : vector<1x32xf32> to vector<64x32xf32>
    %51 = arith.subf %45, %50 : vector<64x32xf32>
    %52 = arith.mulf %51, %51 : vector<64x32xf32>
    %cst_61 = arith.constant dense<0.000000e+00> : vector<32xf32>
    %53 = vector.multi_reduction <add>, %52, %cst_61 [0] : vector<64x32xf32> to vector<32xf32>
    %54 = vector.shape_cast %53 : vector<32xf32> to vector<1x32xf32>
    %cst_62 = arith.constant 6.400000e+01 : f32
    %55 = vector.broadcast %cst_62 : f32 to vector<1x32xf32>
    %56 = arith.divf %54, %55 : vector<1x32xf32>
    %57 = vector.broadcast %49 : vector<1x32xf32> to vector<64x32xf32>
    %58 = arith.subf %45, %57 : vector<64x32xf32>
    %cst_63 = arith.constant 9.99999974E-6 : f32
    %59 = vector.broadcast %cst_63 : f32 to vector<1x32xf32>
    %60 = arith.addf %56, %59 : vector<1x32xf32>
    %61 = math.rsqrt %60 : vector<1x32xf32>
    %62 = vector.broadcast %61 : vector<1x32xf32> to vector<64x32xf32>
    %63 = arith.mulf %58, %62 : vector<64x32xf32>
    %c0_64 = arith.constant 0 : index
    %c0_65 = arith.constant 0 : index
    %64 = vector.load %arg4[%c0_64, %c0_65] : memref<1x32xf32, #tpu.memory_space<vmem>>, vector<1x32xf32>
    %65 = vector.broadcast %64 : vector<1x32xf32> to vector<64x32xf32>
    %66 = arith.mulf %63, %65 : vector<64x32xf32>
    %c0_66 = arith.constant 0 : index
    %c0_67 = arith.constant 0 : index
    %67 = vector.load %arg5[%c0_66, %c0_67] : memref<1x32xf32, #tpu.memory_space<vmem>>, vector<1x32xf32>
    %68 = vector.broadcast %67 : vector<1x32xf32> to vector<64x32xf32>
    %69 = arith.addf %66, %68 : vector<64x32xf32>
    %70 = vector.extract_strided_slice %69 {offsets = [0, 0], sizes = [64, 16], strides = [1, 1]} : vector<64x32xf32> to vector<64x16xf32>
    %71 = vector.extract_strided_slice %69 {offsets = [0, 16], sizes = [64, 16], strides = [1, 1]} : vector<64x32xf32> to vector<64x16xf32>
    %72 = arith.negf %71 : vector<64x16xf32>
    %73 = math.exp %72 : vector<64x16xf32>
    %cst_68 = arith.constant 1.000000e+00 : f32
    %74 = vector.broadcast %cst_68 : f32 to vector<64x16xf32>
    %75 = arith.addf %74, %73 : vector<64x16xf32>
    %76 = arith.divf %74, %75 : vector<64x16xf32>
    %77 = arith.mulf %70, %76 : vector<64x16xf32>
    %78 = vector.shape_cast %77 : vector<64x16xf32> to vector<8x8x16xf32>
    %c0_69 = arith.constant 0 : index
    %c0_70 = arith.constant 0 : index
    %c0_71 = arith.constant 0 : index
    %c0_72 = arith.constant 0 : index
    %79 = vector.load %arg6[%c0_69, %c0_70, %c0_71, %c0_72] : memref<1x8x8x16xf32, #tpu.memory_space<vmem>>, vector<1x8x8x16xf32>
    %80 = vector.shape_cast %79 : vector<1x8x8x16xf32> to vector<8x8x16xf32>
    %81 = vector.shape_cast %78 : vector<8x8x16xf32> to vector<1x8x8x16xf32>
    tpu.vector_store %arg6[%c0_69, %c0_70, %c0_71, %c0_72], %81 {strides = array<i32>} : memref<1x8x8x16xf32, #tpu.memory_space<vmem>>, vector<1x8x8x16xf32>,
    return
  }
  func.func @transform_0(%arg0: i32) -> (i32, i32, i32, i32, i32) {
    %c0_i32 = arith.constant 0 : i32
    %c0_i32_0 = arith.constant 0 : i32
    %c0_i32_1 = arith.constant 0 : i32
    %c0_i32_2 = arith.constant 0 : i32
    %c0_i32_3 = arith.constant 0 : i32
    return %arg0, %c0_i32, %c0_i32_0, %c0_i32_1, %c0_i32_2 : i32, i32, i32, i32, i32
  }
  func.func @transform_1(%arg0: i32) -> (i32, i32, i32, i32) {
    %c0_i32 = arith.constant 0 : i32
    %c0_i32_0 = arith.constant 0 : i32
    %c0_i32_1 = arith.constant 0 : i32
    %c0_i32_2 = arith.constant 0 : i32
    %c0_i32_3 = arith.constant 0 : i32
    return %c0_i32, %c0_i32_0, %c0_i32_1, %c0_i32_2 : i32, i32, i32, i32
  }
  func.func @transform_2(%arg0: i32) -> (i32, i32) {
    %c0_i32 = arith.constant 0 : i32
    %c0_i32_0 = arith.constant 0 : i32
    %c0_i32_1 = arith.constant 0 : i32
    return %c0_i32, %c0_i32_0 : i32, i32
  }
  func.func @transform_3(%arg0: i32) -> (i32, i32) {
    %c0_i32 = arith.constant 0 : i32
    %c0_i32_0 = arith.constant 0 : i32
    %c0_i32_1 = arith.constant 0 : i32
    return %c0_i32, %c0_i32_0 : i32, i32
  }
  func.func @transform_4(%arg0: i32) -> (i32, i32) {
    %c0_i32 = arith.constant 0 : i32
    %c0_i32_0 = arith.constant 0 : i32
    %c0_i32_1 = arith.constant 0 : i32
    return %c0_i32, %c0_i32_0 : i32, i32
  }
  func.func @transform_5(%arg0: i32) -> (i32, i32, i32, i32) {
    %c0_i32 = arith.constant 0 : i32
    %c0_i32_0 = arith.constant 0 : i32
    %c0_i32_1 = arith.constant 0 : i32
    %c0_i32_2 = arith.constant 0 : i32
    return %arg0, %c0_i32, %c0_i32_0, %c0_i32_1 : i32, i32, i32, i32
  }
}

</mosaic_0001>

<bundles_post_ra>
// kernel: downsample_forward.1
= control target key start
LH: loop header
LB: loop body
LE: loop exit
PB: predicated region body
PF: predicated region fallthrough
CT: control target
= control target key end

     0   :  { %10 = vsyncpa [#allocation3], 0  ;;  %s2885_s0 = inlined_call_operand.hbm [shape: bf16[2,9,2,9,16], index: 0, kind: input, shape index: {}]   ;;  %s2886_s1 = inlined_call_operand.hbm [shape: bf16[3,2,16,32], index: 1, kind: input, shape index: {}]   ;;  %s2887_s2 = inlined_call_operand.hbm [shape: f32[1,32], index: 2, kind: input, shape index: {}]   ;;  %s2888_s3 = inlined_call_operand.hbm [shape: f32[1,32], index: 3, kind: input, shape index: {}]   ;;  %s2889_s4 = inlined_call_operand.hbm [shape: f32[1,32], index: 4, kind: input, shape index: {}]   ;;  %s2890_s5 = inlined_call_operand.hbm [shape: f32[2,8,8,16], index: 5, kind: output, shape index: {}]  }
   0x1   :  { %12 = vsyncpa [#allocation3 + $0x1], 0 }
   0x2   :  { %13 = vsyncpa [#allocation6], 0 }
   0x3   :  { %14 = vsyncpa [#allocation9], 0 }
   0x4   :  { %15 = vsyncpa [#allocation4], 0 }
   0x5   :  { %17 = vsyncpa [#allocation4 + $0x1], 0  ;;  %s2352_s18 = smov 0   ;;  %s2354_s19 = smov 0  }
   0x6   :  { %s2356_s20 = smov 0   ;;  %s2358_s21 = smov 0  }
   0x7 LB: > { %s2373_s22 = sadd.s32 4294967295, %s2309_s21   ;;  %s1683_s23 = sadd.s32 4294967294, %s2309_s21   ;;  %s2309_s21 = sphi %s2358_s21, %s2917_s21   ;;  %s2305_s20 = sphi %s2356_s20, %s2916_s20   ;;  %s2301_s19 = sphi %s2354_s19, %s2915_s19   ;;  %s2297_s18 = sphi %s2352_s18, %s2914_s18  }
   0x8   : > { %p43_p0 = scmp.ne.s32.totalorder %s2301_s19, %s2297_s18  ;;  %p2891_p1 = scmp.eq.s32.totalorder %s2373_s22, 0 }
   0x9   : > { %p157_p3 = scmp.eq.s32.totalorder %s1683_s23, 1  ;;  %p1684_p5 = scmp.ge.s32.totalorder %s2309_s21, 1 }
   0xa   : > { %p2382_p4 = por %p2891_p1, %p43_p0  ;;  %p164_p7 = scmp.lt.s32.totalorder %s2309_s21, 3 }
   0xb   : > { %p2387_p6 = por %p157_p3, %p43_p0  ;;  %s2311_s27 = smov [#allocation5]  }
   0xc   : > { %s2895_s24 = scalar_select %p2382_p4, 1, 0 }
   0xd   : > { %s2896_s25 = scalar_select %p2387_p6, 1, 0 }
   0xe   : > { %p2392_p8 = pnand %p1684_p5, %p164_p7  ;;  %s176_s28 = sshll.u32 %s2311_s27, 4  ;;  %s2396_s28 = int_to_ptr.vmem [resolvable:$true] %s176_s28 }
   0xf   : > { %s2312_s30 = smov [#allocation8]   ;;  %s2313_s7 = smov [#allocation7]  }
  0x10   : > { %s2897_s26 = scalar_select %p2392_p8, 1, 0 }
  0x11   : > { %p1969_p9 = pneg %p2392_p8  ;;  %s201_s6 = sshll.u32 %s2312_s30, 4  ;;  %s2407_s6 = int_to_ptr.vmem [resolvable:$true] %s201_s6 }
  0x12   : > { %s2409_s8 = sshll.u32 %s2313_s7, 4  ;;  %s2093_s11 = scalar_lea.hbm %s2886_s1, 768  ;;  %s191_s8 = int_to_ptr.vmem [resolvable:$true] %s2409_s8 }
  0x13   : > { %p2403_p11 = pnand %p1969_p9, %p2891_p1  ;;  %p2094_p12 = scmp.ne.s32.totalorder %s2886_s1, %s2093_s11 }
  0x14   : > { %p2100_p5 = scmp.lt.u32.totalorder %s2093_s11, %s2886_s1 }
  0x15   : > { %p2419_p13 = pneg %p2403_p11 }
  0x17   : > { %p2096_p0 = pnand %p2419_p13, %p2094_p12 }
  0x19   : > { %p2097_p3 = pneg %p2096_p0 }
  0x1b   : > { %p2102_p7 = pnand %p2100_p5, %p2097_p3 }
  0x1d   : > { %2105 = shalt.err (!%p2102_p7)
}
  0x1e   : > { %s2106_s17 = scalar_lea.vmem %s2396_s28, 768  ;;  %p2114_p2 = scmp.lt.s32.totalorder %s2396_s28, %s2396_s28 }
  0x1f   : > { %p2107_p9 = scmp.ne.s32.totalorder %s2396_s28, %s2106_s17  ;;  %p2115_p6 = scmp.lt.s32.totalorder %s2106_s17, %s2106_s17 }
  0x21   : > { %p2109_p10 = pnand %p2107_p9, %p2419_p13  ;;  %p2116_p12 = por %p2115_p6, %p2114_p2 }
  0x23   : > { %p2110_p1 = pneg %p2109_p10 }
  0x25   : > { %p2117_p0 = pnand %p2116_p12, %p2110_p1 }
  0x27   : > { %2120 = shalt.err (!%p2117_p0)
}
  0x28   : > { %s2894_s23 = smov 64   ;;  %s2315_s27 = smov 4  }
  0x29   : > { %1972 = dma.hbm_to_vmem [thread:$0]  (!%p2403_p11), %s2886_s1, 768, %s2396_s28, [#allocation6], %s2894_s23, %s2894_s23, %s2315_s27  }
  0x2a   : > { %s2121_s11 = scalar_lea.hbm %s2888_s3, 16 }
  0x2b   : > { %p2122_p1 = scmp.ne.s32.totalorder %s2888_s3, %s2121_s11  ;;  %p2128_p10 = scmp.lt.u32.totalorder %s2121_s11, %s2888_s3 }
  0x2d   : > { %p2124_p2 = pnand %p2122_p1, %p2419_p13 }
  0x2f   : > { %p2125_p6 = pneg %p2124_p2 }
  0x31   : > { %p2130_p3 = pnand %p2128_p10, %p2125_p6 }
  0x33   : > { %2133 = shalt.err (!%p2130_p3)
}
  0x34   : > { %s2134_s28 = scalar_lea.vmem %s2407_s6, 16  ;;  %s2141_s17 = scalar_lea.vmem %s2407_s6, 32 }
  0x35   : > { %p2135_p5 = scmp.ne.s32.totalorder %s2407_s6, %s2134_s28  ;;  %p2142_p12 = scmp.lt.s32.totalorder %s2407_s6, %s2407_s6 }
  0x36   : > { %p2143_p0 = scmp.lt.s32.totalorder %s2141_s17, %s2134_s28 }
  0x37   : > { %p2137_p7 = pnand %p2135_p5, %p2419_p13 }
  0x38   : > { %p2144_p1 = por %p2143_p0, %p2142_p12 }
  0x39   : > { %p2138_p9 = pneg %p2137_p7 }
  0x3b   : > { %p2145_p2 = pnand %p2144_p1, %p2138_p9 }
  0x3d   : > { %2148 = shalt.err (!%p2145_p2)
}
  0x3e   : > { %1978 = dma.hbm_to_vmem [thread:$0]  (!%p2403_p11), %s2888_s3, 16, %s2407_s6, [#allocation9]  }
  0x3f   : > { %s2149_s11 = scalar_lea.hbm %s2887_s2, 16 }
  0x40   : > { %p2150_p6 = scmp.ne.s32.totalorder %s2887_s2, %s2149_s11  ;;  %p2156_p5 = scmp.lt.u32.totalorder %s2149_s11, %s2887_s2 }
  0x42   : > { %p2152_p10 = pnand %p2150_p6, %p2419_p13 }
  0x44   : > { %p2153_p3 = pneg %p2152_p10 }
  0x46   : > { %p2158_p7 = pnand %p2156_p5, %p2153_p3 }
  0x48   : > { %2161 = shalt.err (!%p2158_p7)
}
  0x49   : > { %s2162_s28 = scalar_lea.vmem %s191_s8, 16  ;;  %s2169_s6 = scalar_lea.vmem %s191_s8, 32 }
  0x4a   : > { %p2163_p9 = scmp.ne.s32.totalorder %s191_s8, %s2162_s28  ;;  %p2170_p1 = scmp.lt.s32.totalorder %s191_s8, %s191_s8 }
  0x4b   : > { %p2171_p2 = scmp.lt.s32.totalorder %s2169_s6, %s2162_s28 }
  0x4c   : > { %p2165_p12 = pnand %p2163_p9, %p2419_p13 }
  0x4d   : > { %p2172_p4 = por %p2171_p2, %p2170_p1 }
  0x4e   : > { %p2166_p0 = pneg %p2165_p12 }
  0x50   : > { %p2173_p8 = pnand %p2172_p4, %p2166_p0 }
  0x52   : > { %2176 = shalt.err (!%p2173_p8)
}
  0x53   : > { %1975 = dma.hbm_to_vmem [thread:$0]  (!%p2403_p11), %s2887_s2, 16, %s191_s8, [#allocation6]  }
  0x54   : > { %s2316_s7 = smov [#allocation10]   ;;  %s2177_s12 = scalar_lea.hbm %s2889_s4, 16 }
  0x55   : > { %s212_s9 = sshll.u32 %s2316_s7, 4  ;;  %p2178_p6 = scmp.ne.s32.totalorder %s2889_s4, %s2177_s12  ;;  %s213_s9 = int_to_ptr.vmem [resolvable:$true] %s212_s9 }
  0x56   : > { %p2184_p10 = scmp.lt.u32.totalorder %s2177_s12, %s2889_s4 }
  0x57   : > { %p2180_p4 = pnand %p2178_p6, %p2419_p13 }
  0x59   : > { %p2181_p8 = pneg %p2180_p4 }
  0x5b   : > { %p2186_p3 = pnand %p2184_p10, %p2181_p8 }
  0x5d   : > { %2189 = shalt.err (!%p2186_p3)
}
  0x5e   : > { %s2190_s8 = scalar_lea.vmem %s213_s9, 16  ;;  %s2197_s6 = scalar_lea.vmem %s213_s9, 32 }
  0x5f   : > { %p2191_p5 = scmp.ne.s32.totalorder %s213_s9, %s2190_s8  ;;  %p2198_p12 = scmp.lt.s32.totalorder %s213_s9, %s213_s9 }
  0x60   : > { %p2199_p0 = scmp.lt.s32.totalorder %s2197_s6, %s2190_s8 }
  0x61   : > { %p2193_p7 = pnand %p2191_p5, %p2419_p13 }
  0x62   : > { %p2200_p1 = por %p2199_p0, %p2198_p12 }
  0x63   : > { %p2194_p9 = pneg %p2193_p7 }
  0x65   : > { %p2201_p2 = pnand %p2200_p1, %p2194_p9 }
  0x67   : > { %2204 = shalt.err (!%p2201_p2)
}
  0x68   : > { %1981 = dma.hbm_to_vmem [thread:$0]  (!%p2403_p11), %s2889_s4, 16, %s213_s9, [#allocation9]  }
  0x69   : > { %s2505_s14 = sadd.s32 1, %s2309_s21   ;;  %s30_s7 = sadd.s32 1, %s2305_s20 }
  0x6a   : > { %s27_s29 = ssub.s32 %s2309_s21, %s2505_s14  ;;  %p37_p13 = scmp.ne.s32.totalorder %s2305_s20, %s2301_s19 }
  0x6b   : > { %p28_p6 = scmp.eq.s32.totalorder %s27_s29, 0  ;;  %p38_p4 = scmp.eq.s32.totalorder %s2309_s21, 0 }
  0x6c   : > { %p2900_p8 = scmp.eq.s32.totalorder %s2373_s22, 1  ;;  %p1994_p3 = scmp.lt.s32.totalorder %s2309_s21, 2 }
  0x6d   : > { %s2521_s11 = scalar_select %p28_p6, %s2305_s20, %s30_s7  }
  0x6e   : > { %p2515_p10 = por %p2900_p8, %p37_p13  ;;  %p39_p5 = por %p38_p4, %p37_p13 }
  0x6f   : > { %s223_s12 = sand.u32 1, %s2305_s20   ;;  %s1947_s9 = smul.u32 2304, %s2309_s21 }
  0x70   : > { %s1946_s13 = smul.u32 144, %s223_s12  ;;  %p2525_p11 = pnand %p1994_p3, %p39_p5 }
  0x71   : > { %s2532_s8 = scalar_lea.hbm %s2885_s0, %s1947_s9  ;;  %s2536_s30 = scalar_lea.sflag [#allocation3], %s223_s12 }
  0x72   : > { %s227_s6 = scalar_lea.vmem [#allocation2], %s1946_s13  ;;  %s2205_s7 = scalar_lea.hbm %s2532_s8, 2304 }
  0x73   : > { %s234_s17 = sshll.u32 %s227_s6, 4  ;;  %p2206_p7 = scmp.ne.s32.totalorder %s2532_s8, %s2205_s7  ;;  %s2534_s17 = int_to_ptr.vmem [resolvable:$true] %s234_s17 }
  0x74   : > { %p2207_p9 = pneg %p2525_p11  ;;  %s2210_s16 = scalar_lea.hbm %s2885_s0, 4608 }
  0x75   : > { %p2211_p1 = scmp.lt.u32.totalorder %s2532_s8, %s2885_s0  ;;  %p2212_p2 = scmp.lt.u32.totalorder %s2210_s16, %s2205_s7 }
  0x76   : > { %p2208_p12 = pnand %p2207_p9, %p2206_p7  ;;  %p2214_p6 = scmp.lt.u32.totalorder %s2205_s7, %s2532_s8 }
  0x77   : > { %p2213_p13 = por %p2212_p2, %p2211_p1 }
  0x78   : > { %p2209_p0 = pneg %p2208_p12 }
  0x79   : > { %p2215_p4 = por %p2214_p6, %p2213_p13 }
  0x7b   : > { %p2216_p8 = pnand %p2215_p4, %p2209_p0 }
  0x7d   : > { %2219 = shalt.err (!%p2216_p8)
}
  0x7e   : > { %s2220_s12 = scalar_lea.vmem %s2534_s17, 2304  ;;  %s2317_s13 = smov [#allocation2]  }
  0x7f   : > { %p2221_p3 = scmp.ne.s32.totalorder %s2534_s17, %s2220_s12  ;;  %s2225_s6 = sshll.u32 %s2317_s13, 4  ;;  %s2226_s6 = int_to_ptr.vmem [resolvable:$false] %s2225_s6 }
  0x80   : > { %s2227_s23 = scalar_lea.vmem %s2226_s6, 4608  ;;  %p2228_p12 = scmp.lt.s32.totalorder %s2534_s17, %s2226_s6 }
  0x81   : > { %p2223_p5 = pnand %p2221_p3, %p2207_p9  ;;  %p2229_p1 = scmp.lt.s32.totalorder %s2227_s23, %s2220_s12 }
  0x83   : > { %p2224_p7 = pneg %p2223_p5  ;;  %p2230_p2 = por %p2229_p1, %p2228_p12 }
  0x85   : > { %p2231_p13 = pnand %p2230_p2, %p2224_p7 }
  0x87   : > { %2234 = shalt.err (!%p2231_p13)
}
  0x88   : > { %s2903_s7 = smov 64   ;;  %p2904_p9 = scmp.ne.s32.totalorder %s2897_s26, 0 }
  0x89   : > { %1985 = dma.hbm_to_vmem [thread:$0]  (!%p2525_p11), %s2532_s8, 2304, %s2534_s17, %s2536_s30, %s2903_s7, %s2903_s7, %s2315_s27  }
  0x8a   : > { %246 = sbr.rel (%p2904_p9) target bundleno = 696 (0x2b8), region = 40  ;;  %s2570_s29 = sand.u32 (!%p2904_p9), 1, %s2301_s19  }
  0x8b   : > { %s1948_s9 = smul.u32 (!%p2904_p9), 144, %s2570_s29  ;;  %s249_s16 = scalar_lea.sflag (!%p2904_p9), [#allocation3], %s2570_s29 }
  0x8c   : > { %p2905_p0 = scmp.ne.s32.totalorder (!%p2904_p9), %s2895_s24, 0 }
  0x8d   : > { %s2574_s28 = scalar_lea.vmem (!%p2904_p9), [#allocation2], %s1948_s9 }
  0x91   : > { %2280 = dma.done.wait (%p2905_p0), %s249_s16, 2304  }
  0x92   : > { %2282 = vsyncadd (%p2905_p0), %s249_s16, 4294964992  ;;  %p2906_p11 = scmp.eq.s32.totalorder %s2373_s22, 0 }
  0x94   : > { %2284 = dma.done.wait (%p2906_p11), [#allocation6], 784   ;;  %p2907_p6 = pmov %p2906_p11 }
  0x96   : > { %2286 = vsyncadd (%p2907_p6), [#allocation6], 4294966512  ;;  %p2908_p4 = pmov %p2907_p6 }
  0x98   : > { %2288 = dma.done.wait (%p2908_p4), [#allocation9], 32   ;;  %p2909_p8 = pmov %p2908_p4 }
  0x99   : > { %vm314_vm0 = vsmask.f32 3328  ;;  %vm315_vm1 = vsmask.f32 7440  ;;  %v2041_v0 = vld [vmem:[#allocation5 + $0x8] sm:$0xff]   ;;  %v2042_v1 = vld [vmem:[#allocation5 + $0x18] sm:$0xff]  }
  0x9a   : > { %2290 = vsyncadd (%p2909_p8), [#allocation9], 4294967264  ;;  %1846 = vmatprep.subr.bf16.mxu1 %v2041_v0  ;;  %v2589_v2 = vld [vmem:[%s2574_s28] sm:$0xf]  ;;  %v2592_v3 = vld [vmem:[%s2574_s28 + $0x10] sm:$0xf]  ;;  %1876 = vmatprep.subr.bf16.mxu0 %v2042_v1 }
  0x9b   : > { %v306_v4 = vld [vmem:[%s2574_s28 + $0x4] sm:$0x1]  ;;  %1847 = vmatpush3.bf16.msra.mxu1 %v2041_v0  ;;  %v307_v5 = vld [vmem:[%s2574_s28 + $0x14] sm:$0x1]  ;;  %v318_v6 = vshrl.u32 %v2589_v2, 16  ;;  %v321_v7 = vshll.u32 %v2589_v2, 16  ;;  %1877 = vmatpush3.bf16.msra.mxu0 %v2042_v1  ;;  %vm2612_vm3 = vmor %vm314_vm0, %vm315_vm1 }
  0x9c   : > { %v327_v8 = vshll.u32 %v306_v4, 16  ;;  %v332_v9 = vshrl.u32 %v2592_v3, 16  ;;  %v335_v10 = vshll.u32 %v2592_v3, 16  ;;  %v341_v11 = vshll.u32 %v307_v5, 16  ;;  %v2600_v16 = vld [vmem:[#allocation5] sm:$0xff]   ;;  %s2318_s24 = smov 112  }
  0x9d   : > { %vm450_vm2 = vcmask 130048   ;;  %v320_v12 = vrot.slane %v318_v6, 4  ;;  %v323_v13 = vrot.slane %v321_v7, 5  ;;  %v2602_v17 = vld [vmem:[#allocation5 + $0x20] sm:$0xff]   ;;  %v1732_v20 = vld [vmem:[%s2574_s28 + $0x8] sm:$0xf]  ;;  %1856 = vmatprep.subr.bf16.mxu1 %v2600_v16 }
  0x9e   : > { %v329_v14 = vrot.slane %v327_v8, 5  ;;  %v334_v15 = vrot.slane %v332_v9, 4  ;;  %v337_v18 = vrot.slane %v335_v10, 5  ;;  %v343_v19 = vrot.slane %v341_v11, 5  ;;  %v1733_v21 = vld [vmem:[%s2574_s28 + $0xc] sm:$0x1]  ;;  %1886 = vmatprep.subr.bf16.mxu0 %v2602_v17 }
  0x9f   : > { %v324_v22 = vor.u32 %v323_v13, %v320_v12  ;;  %v1734_v23 = vld [vmem:[%s2574_s28 + $0x18] sm:$0xf]  ;;  %v1735_v24 = vld [vmem:[%s2574_s28 + $0x1c] sm:$0x1]  ;;  %v771_v25 = vshrl.u32 %v1732_v20, 16  ;;  %v774_v26 = vshll.u32 %v1732_v20, 16 }
  0xa0   : > { %v338_v28 = vor.u32 %v337_v18, %v334_v15  ;;  %v780_v29 = vshll.u32 %v1733_v21, 16  ;;  %v785_v30 = vshrl.u32 %v1734_v23, 16  ;;  %v788_v31 = vshll.u32 %v1734_v23, 16  ;;  %v2617_v40 = vld [vmem:[%s2574_s28 + $0x20] sm:$0xf]  ;;  %s1696_s26 = sshll.u32 %s2570_s29, 6 }
  0xa1   : > { %v325_v32 = vrot.slane %v324_v22, 4  ;;  %v773_v33 = vrot.slane %v771_v25, 4  ;;  %v776_v34 = vrot.slane %v774_v26, 5  ;;  %v794_v35 = vshll.u32 %v1735_v24, 16  ;;  %v2622_v44 = vld [vmem:[%s2574_s28 + $0x30] sm:$0xf] }
  0xa2   : > { %v339_v36 = vrot.slane %v338_v28, 4  ;;  %v782_v37 = vrot.slane %v780_v29, 5  ;;  %v787_v38 = vrot.slane %v785_v30, 4  ;;  %v790_v39 = vrot.slane %v788_v31, 5  ;;  %v308_v45 = vld [vmem:[%s2574_s28 + $0x24] sm:$0x1] }
  0xa3   : > { %v330_v41 = vsel %vm2612_vm3, %v325_v32, %v329_v14  ;;  %v777_v42 = vor.u32 %v776_v34, %v773_v33  ;;  %v796_v43 = vrot.slane %v794_v35, 5  ;;  %v346_v46 = vshrl.u32 %v2617_v40, 16  ;;  %v309_v49 = vld [vmem:[%s2574_s28 + $0x34] sm:$0x1]  ;;  %v1736_v52 = vld [vmem:[%s2574_s28 + $0x28] sm:$0xf] }
  0xa4   : > { %v344_v47 = vsel %vm2612_vm3, %v339_v36, %v343_v19  ;;  %v791_v48 = vor.u32 %v790_v39, %v787_v38  ;;  %v349_v50 = vshll.u32 %v2617_v40, 16  ;;  %v355_v51 = vshll.u32 %v308_v45, 16  ;;  %v1737_v61 = vld [vmem:[%s2574_s28 + $0x2c] sm:$0x1]  ;;  %v1738_v1 = vld [vmem:[%s2574_s28 + $0x38] sm:$0xf] }
  0xa5   : > { %v1697_v53 = vcombine.low %v330_v41, %v344_v47  ;;  %v778_v54 = vrot.slane %v777_v42, 4  ;;  %v348_v55 = vrot.slane %v346_v46, 4  ;;  %v360_v56 = vshrl.u32 %v2622_v44, 16  ;;  %v1739_v8 = vld [vmem:[%s2574_s28 + $0x3c] sm:$0x1]  ;;  %s294_s27 = scalar_lea.vmem [#allocation11], %s1696_s26 }
  0xa6   : > { %v792_v57 = vrot.slane %v791_v48, 4  ;;  %v351_v58 = vrot.slane %v349_v50, 5  ;;  %v357_v59 = vrot.slane %v355_v51, 5  ;;  %v363_v60 = vshll.u32 %v2622_v44, 16  ;;  %v2642_v10 = vld [vmem:[%s2574_s28 + $0x40] sm:$0xf] }
  0xa7   : > { %1848 = vmatprep.mubr.msk.bf16.mxu1 %vm450_vm2, %v1697_v53  ;;  %v783_v62 = vsel %vm2612_vm3, %v778_v54, %v782_v37  ;;  %v362_v63 = vrot.slane %v360_v56, 4  ;;  %v369_v0 = vshll.u32 %v309_v49, 16  ;;  %v799_v4 = vshrl.u32 %v1736_v52, 16  ;;  %v2645_v21 = vld [vmem:[%s2574_s28 + $0x50] sm:$0xf]  ;;  %s1815_s15 = sshll.u32 %s2373_s22, 10 }
  0xa8   : > { %v797_v5 = vsel %vm2612_vm3, %v792_v57, %v796_v43  ;;  %v352_v6 = vor.u32 %v351_v58, %v348_v55  ;;  %v365_v7 = vrot.slane %v363_v60, 5  ;;  %v802_v9 = vshll.u32 %v1736_v52, 16  ;;  %v310_v25 = vld [vmem:[%s2574_s28 + $0x44] sm:$0x1]  ;;  %v311_v34 = vld [vmem:[%s2574_s28 + $0x54] sm:$0x1]  ;;  %s2836_s12 = scalar_lea.hbm %s2890_s5, %s1815_s15 }
  0xa9   : > { %v1748_v11 = vcombine.low %v783_v62, %v797_v5  ;;  %v371_v12 = vrot.slane %v369_v0, 5  ;;  %v801_v13 = vrot.slane %v799_v4, 4  ;;  %v808_v14 = vshll.u32 %v1737_v61, 16  ;;  %v1740_v42 = vld [vmem:[%s2574_s28 + $0x48] sm:$0xf]  ;;  %v2658_v43 = vld [vmem:[#allocation5 + $0x10] sm:$0xff]  }
  0xaa   : > { %v353_v15 = vrot.slane %v352_v6, 4  ;;  %v366_v18 = vor.u32 %v365_v7, %v362_v63  ;;  %v804_v19 = vrot.slane %v802_v9, 5  ;;  %v813_v20 = vshrl.u32 %v1738_v1, 16  ;;  %v1741_v49 = vld [vmem:[%s2574_s28 + $0x4c] sm:$0x1]  ;;  %s1572_s8 = sshll.u32 %s294_s27, 4  ;;  %s2838_s8 = int_to_ptr.vmem [resolvable:$true] %s1572_s8 }
  0xab   : > { %1878 = vmatprep.mubr.msk.bf16.mxu0 %vm450_vm2, %v1748_v11  ;;  %v810_v22 = vrot.slane %v808_v14, 5  ;;  %v816_v23 = vshll.u32 %v1738_v1, 16  ;;  %v822_v24 = vshll.u32 %v1739_v8, 16  ;;  %v374_v26 = vshrl.u32 %v2642_v10, 16  ;;  %v1742_v50 = vld [vmem:[%s2574_s28 + $0x58] sm:$0xf] }
  0xac   : > { %v358_v28 = vsel %vm2612_vm3, %v353_v15, %v357_v59  ;;  %v367_v29 = vrot.slane %v366_v18, 4  ;;  %v805_v30 = vor.u32 %v804_v19, %v801_v13  ;;  %v815_v31 = vrot.slane %v813_v20, 4  ;;  %v1743_v58 = vld [vmem:[%s2574_s28 + $0x5c] sm:$0x1]  ;;  %v2669_v0 = vld [vmem:[%s2574_s28 + $0x60] sm:$0xf] }
  0xad   : > { %v818_v32 = vrot.slane %v816_v23, 5  ;;  %v824_v33 = vrot.slane %v822_v24, 5  ;;  %v376_v35 = vrot.slane %v374_v26, 4  ;;  %v377_v36 = vshll.u32 %v2642_v10, 16  ;;  %v2674_v7 = vld [vmem:[%s2574_s28 + $0x70] sm:$0xf] }
  0xae   : > { %v372_v37 = vsel %vm2612_vm3, %v367_v29, %v371_v12  ;;  %v806_v38 = vrot.slane %v805_v30, 4  ;;  %v383_v39 = vshll.u32 %v310_v25, 16  ;;  %v388_v41 = vshrl.u32 %v2645_v21, 16  ;;  %v312_v8 = vld [vmem:[%s2574_s28 + $0x64] sm:$0x1]  ;;  %v2678_v13 = vld [vmem:[#allocation5 + $0x28] sm:$0xff]  }
  0xaf   : > { %v1698_v45 = vcombine.low %v358_v28, %v372_v37  ;;  %v819_v46 = vor.u32 %v818_v32, %v815_v31  ;;  %v379_v47 = vrot.slane %v377_v36, 5  ;;  %v391_v48 = vshll.u32 %v2645_v21, 16  ;;  %v313_v20 = vld [vmem:[%s2574_s28 + $0x74] sm:$0x1]  ;;  %v1745_v32 = vld [vmem:[%s2574_s28 + $0x6c] sm:$0x1] }
  0xb0   : > { %v811_v51 = vsel %vm2612_vm3, %v806_v38, %v810_v22  ;;  %v385_v52 = vrot.slane %v383_v39, 5  ;;  %v390_v53 = vrot.slane %v388_v41, 4  ;;  %v397_v54 = vshll.u32 %v311_v34, 16  ;;  %v1744_v22 = vld [vmem:[%s2574_s28 + $0x68] sm:$0xf]  ;;  %s1559_s22 = scalar_lea.sflag [#allocation4], %s2570_s29 }
  0xb1   : > { %1849 = vmatmul.mubr.msk.bf16.vlgmr.msra.gmra.mrb[0].mxu1 %vm450_vm2, %v1698_v45  ;;  %v820_v55 = vrot.slane %v819_v46, 4  ;;  %v380_v56 = vor.u32 %v379_v47, %v376_v35  ;;  %v393_v57 = vrot.slane %v391_v48, 5  ;;  %v827_v59 = vshrl.u32 %v1740_v42, 16  ;;  %v1746_v37 = vld [vmem:[%s2574_s28 + $0x78] sm:$0xf]  ;;  %s2235_s13 = scalar_lea.vmem %s2838_s8, 1024 }
  0xb2   : > { %1857 = vmatpush3.bf16.msra.mxu1 %v2600_v16  ;;  %v399_v60 = vrot.slane %v397_v54, 5  ;;  %v830_v61 = vshll.u32 %v1740_v42, 16  ;;  %v836_v62 = vshll.u32 %v1741_v49, 16  ;;  %v841_v63 = vshrl.u32 %v1742_v50, 16  ;;  %p2236_p3 = scmp.ne.s32.totalorder %s2838_s8, %s2235_s13  ;;  %s2319_s6 = smov [#allocation11]  }
  0xb3   : > { %v825_v1 = vsel %vm2612_vm3, %v820_v55, %v824_v33  ;;  %v381_v4 = vrot.slane %v380_v56, 4  ;;  %v394_v5 = vor.u32 %v393_v57, %v390_v53  ;;  %v829_v6 = vrot.slane %v827_v59, 4  ;;  %1866 = vmatprep.subr.bf16.mxu1 %v2658_v43  ;;  %s2239_s23 = sshll.u32 %s2319_s6, 4  ;;  %s2240_s23 = int_to_ptr.vmem [resolvable:$false] %s2239_s23 }
  0xb4   : > { %v1749_v16 = vcombine.low %v811_v51, %v825_v1  ;;  %v832_v9 = vrot.slane %v830_v61, 5  ;;  %v838_v11 = vrot.slane %v836_v62, 5  ;;  %v843_v12 = vrot.slane %v841_v63, 4  ;;  %p2237_p5 = pnand %p2236_p3, %p2515_p10  ;;  %s2241_s7 = scalar_lea.vmem %s2240_s23, 2048 }
  0xb5   : > { %v386_v14 = vsel %vm2612_vm3, %v381_v4, %v385_v52  ;;  %v395_v15 = vrot.slane %v394_v5, 4  ;;  %v844_v18 = vshll.u32 %v1742_v50, 16  ;;  %v850_v19 = vshll.u32 %v1743_v58, 16  ;;  %v1747_v52 = vld [vmem:[%s2574_s28 + $0x7c] sm:$0x1]  ;;  %p2242_p12 = scmp.lt.s32.totalorder %s2838_s8, %s2240_s23  ;;  %p2243_p1 = scmp.lt.s32.totalorder %s2241_s7, %s2235_s13 }
  0xb6   : > { %1879 = vmatmul.mubr.msk.bf16.vlgmr.msra.gmra.mrb[0].mxu0 %vm450_vm2, %v1749_v16  ;;  %v833_v23 = vor.u32 %v832_v9, %v829_v6  ;;  %v402_v24 = vshrl.u32 %v2669_v0, 16  ;;  %v405_v25 = vshll.u32 %v2669_v0, 16  ;;  %v411_v26 = vshll.u32 %v312_v8, 16  ;;  %p2238_p7 = pneg %p2237_p5 }
  0xb7   : > { %1887 = vmatpush3.bf16.msra.mxu0 %v2602_v17  ;;  %v400_v28 = vsel %vm2612_vm3, %v395_v15, %v399_v60  ;;  %v846_v29 = vrot.slane %v844_v18, 5  ;;  %v852_v30 = vrot.slane %v850_v19, 5  ;;  %v416_v31 = vshrl.u32 %v2674_v7, 16  ;;  %v1775_v19 = vld [vmem:[%s2574_s28 + $0x14] sm:$0x1]  ;;  %p2244_p2 = por %p2243_p1, %p2242_p12 }
  0xb8   : > { %v1699_v33 = vcombine.low %v386_v14, %v400_v28  ;;  %v834_v34 = vrot.slane %v833_v23, 4  ;;  %v404_v35 = vrot.slane %v402_v24, 4  ;;  %v407_v36 = vrot.slane %v405_v25, 5  ;;  %1896 = vmatprep.subr.bf16.mxu0 %v2678_v13 }
  0xb9   : > { %v847_v38 = vor.u32 %v846_v29, %v843_v12  ;;  %v413_v39 = vrot.slane %v411_v26, 5  ;;  %v418_v41 = vrot.slane %v416_v31, 4  ;;  %v419_v17 = vshll.u32 %v2674_v7, 16  ;;  %v1774_v12 = vld [vmem:[%s2574_s28 + $0x10] sm:$0xf]  ;;  %p2245_p13 = pnand %p2244_p2, %p2238_p7 }
  0xba   : > { %1852 = vmatprep.mubr.msk.bf16.mxu1 %vm450_vm2, %v1699_v33  ;;  %v408_v42 = vor.u32 %v407_v36, %v404_v35  ;;  %v425_v45 = vshll.u32 %v313_v20, 16  ;;  %v855_v46 = vshrl.u32 %v1744_v22, 16  ;;  %v839_v47 = vsel %vm2612_vm3, %v834_v34, %v838_v11  ;;  %v1776_v20 = vld [vmem:[%s2574_s28 + $0x20] sm:$0xf]  ;;  %v1778_v36 = vld [vmem:[%s2574_s28 + $0x30] sm:$0xf] }
  0xbb   : > { %v848_v48 = vrot.slane %v847_v38, 4  ;;  %v421_v49 = vrot.slane %v419_v17, 5  ;;  %v858_v50 = vshll.u32 %v1744_v22, 16  ;;  %v864_v54 = vshll.u32 %v1745_v32, 16  ;;  %v1777_v22 = vld [vmem:[%s2574_s28 + $0x24] sm:$0x1] }
  0xbc   : > { %v409_v51 = vrot.slane %v408_v42, 4  ;;  %v857_v53 = vrot.slane %v855_v46, 4  ;;  %v869_v55 = vshrl.u32 %v1746_v37, 16  ;;  %v427_v58 = vrot.slane %v425_v45, 5 }
  0xbd   : > { %v853_v56 = vsel %vm2612_vm3, %v848_v48, %v852_v30  ;;  %v422_v57 = vor.u32 %v421_v49, %v418_v41  ;;  %v860_v59 = vrot.slane %v858_v50, 5  ;;  %v872_v62 = vshll.u32 %v1746_v37, 16 }
  0xbe   : > { %v1750_v60 = vcombine.low %v839_v47, %v853_v56  ;;  %v871_v61 = vrot.slane %v869_v55, 4  ;;  %v414_v63 = vsel %vm2612_vm3, %v409_v51, %v413_v39  ;;  %v878_v5 = vshll.u32 %v1747_v52, 16  ;;  %v1780_v39 = vld [vmem:[%s2574_s28 + $0x40] sm:$0xf] }
  0xbf   : > { %v423_v1 = vrot.slane %v422_v57, 4  ;;  %v861_v4 = vor.u32 %v860_v59, %v857_v53  ;;  %v866_v6 = vrot.slane %v864_v54, 5  ;;  %v874_v8 = vrot.slane %v872_v62, 5  ;;  %v2050_v51 = vld [vmem:[%s2574_s28 + $0x30] ss:$16 sps:$4 sm:$0xff]  }
  0xc0   : > { %1882 = vmatprep.mubr.msk.bf16.mxu0 %vm450_vm2, %v1750_v60  ;;  %v1706_v11 = vcombine.low %v2589_v2, %v2592_v3  ;;  %v880_v18 = vrot.slane %v878_v5, 5  ;;  %v1128_v23 = vshrl.u32 %v1774_v12, 16  ;;  %v1131_v24 = vshll.u32 %v1774_v12, 16  ;;  %v2047_v3 = vld [vmem:[%s2574_s28 + $0x10] ss:$16 sps:$4 sm:$0xff]  }
  0xc1   : > { %v428_v16 = vsel %vm2612_vm3, %v423_v1, %v427_v58  ;;  %v862_v9 = vrot.slane %v861_v4, 4  ;;  %v875_v15 = vor.u32 %v874_v8, %v871_v61  ;;  %v1142_v28 = vshrl.u32 %v1776_v20, 16  ;;  %v1781_v53 = vld [vmem:[%s2574_s28 + $0x44] sm:$0x1]  ;;  %v1782_v54 = vld [vmem:[%s2574_s28 + $0x50] sm:$0xf] }
  0xc2   : > { %v1700_v14 = vcombine.low %v414_v63, %v428_v16  ;;  %v1145_v2 = vshll.u32 %v1776_v20, 16  ;;  %v1130_v29 = vrot.slane %v1128_v23, 4  ;;  %v1133_v30 = vrot.slane %v1131_v24, 5  ;;  %v1784_v57 = vld [vmem:[%s2574_s28 + $0x60] sm:$0xf] }
  0xc3   : > { %v867_v25 = vsel %vm2612_vm3, %v862_v9, %v866_v6  ;;  %v876_v26 = vrot.slane %v875_v15, 4  ;;  %v1137_v31 = vshll.u32 %v1775_v19, 16  ;;  %v1144_v33 = vrot.slane %v1142_v28, 4  ;;  %v2052_v60 = vld [vmem:[%s2574_s28 + $0x50] ss:$16 sps:$4 sm:$0xff]  }
  0xc4   : > { %1853 = vmatmul.mubr.msk.bf16.gmra.mrb[4].mxu1 %vm450_vm2, %v1700_v14  ;;  %v1147_v34 = vrot.slane %v1145_v2, 5  ;;  %v1151_v35 = vshll.u32 %v1777_v22, 16  ;;  %v1134_v38 = vor.u32 %v1133_v30, %v1130_v29  ;;  %v1707_v41 = vcombine.low %v2617_v40, %v2622_v44  ;;  %v1779_v44 = vld [vmem:[%s2574_s28 + $0x34] sm:$0x1]  ;;  %v1785_v4 = vld [vmem:[%s2574_s28 + $0x64] sm:$0x1] }
  0xc5   : > { %1858 = vmatprep.mubr.msk.bf16.mxu1 %vm450_vm2, %v1706_v11  ;;  %v881_v32 = vsel %vm2612_vm3, %v876_v26, %v880_v18  ;;  %v1156_v42 = vshrl.u32 %v1778_v36, 16  ;;  %v1159_v45 = vshll.u32 %v1778_v36, 16  ;;  %v1708_v46 = vcombine.low %v2642_v10, %v2645_v21  ;;  %v1783_v61 = vld [vmem:[%s2574_s28 + $0x54] sm:$0x1]  ;;  %v1786_v8 = vld [vmem:[%s2574_s28 + $0x70] sm:$0xf] }
  0xc6   : > { %v1751_v37 = vcombine.low %v867_v25, %v881_v32  ;;  %v1148_v17 = vor.u32 %v1147_v34, %v1144_v33  ;;  %v1170_v47 = vshrl.u32 %v1780_v39, 16  ;;  %v1173_v48 = vshll.u32 %v1780_v39, 16  ;;  %v2055_v12 = vld [vmem:[%s2574_s28 + $0x8] ss:$16 sps:$4 sm:$0xff]   ;;  %v1787_v32 = vld [vmem:[%s2574_s28 + $0x74] sm:$0x1] }
  0xc7   : > { %v1139_v49 = vrot.slane %v1137_v31, 5  ;;  %v1153_v50 = vrot.slane %v1151_v35, 5  ;;  %v1135_v52 = vrot.slane %v1134_v38, 4  ;;  %v1158_v55 = vrot.slane %v1156_v42, 4  ;;  %v2056_v42 = vld [vmem:[%s2574_s28 + $0x28] ss:$16 sps:$4 sm:$0xff]  }
  0xc8   : > { %1883 = vmatmul.mubr.msk.bf16.gmra.mrb[4].mxu0 %vm450_vm2, %v1751_v37  ;;  %v1149_v40 = vrot.slane %v1148_v17, 4  ;;  %v1161_v10 = vrot.slane %v1159_v45, 5  ;;  %v1172_v21 = vrot.slane %v1170_v47, 4  ;;  %v1175_v56 = vrot.slane %v1173_v48, 5  ;;  %v1789_v17 = vld [vmem:[%s2574_s28 + $0x84] sm:$0x1] }
  0xc9   : > { %1888 = vmatprep.mubr.msk.bf16.mxu0 %vm450_vm2, %v2047_v3  ;;  %v1184_v58 = vshrl.u32 %v1782_v54, 16  ;;  %v1187_v59 = vshll.u32 %v1782_v54, 16  ;;  %v1198_v62 = vshrl.u32 %v1784_v57, 16  ;;  %v1201_v63 = vshll.u32 %v1784_v57, 16  ;;  %v2054_v3 = vld [vmem:[%s2574_s28 + $0x70] ss:$16 sps:$4 sm:$0xff]  }
  0xca   : > { %v1709_v1 = vcombine.low %v2669_v0, %v2674_v7  ;;  %v1165_v16 = vshll.u32 %v1779_v44, 16  ;;  %v1179_v9 = vshll.u32 %v1781_v53, 16  ;;  %v1140_v14 = vsel %vm2612_vm3, %v1135_v52, %v1139_v49  ;;  %v1788_v7 = vld [vmem:[%s2574_s28 + $0x80] sm:$0xf] }
  0xcb   : > { %v1186_v5 = vrot.slane %v1184_v58, 4  ;;  %v1189_v6 = vrot.slane %v1187_v59, 5  ;;  %v1203_v11 = vrot.slane %v1201_v63, 5  ;;  %v1154_v15 = vsel %vm2612_vm3, %v1149_v40, %v1153_v50 }
  0xcc   : > { %1859 = vmatmul.mubr.msk.bf16.vlgmr.msra.gmra.mrb[0].mxu1 %vm450_vm2, %v1707_v41  ;;  %v1162_v18 = vor.u32 %v1161_v10, %v1158_v55  ;;  %v1176_v0 = vor.u32 %v1175_v56, %v1172_v21  ;;  %v1193_v19 = vshll.u32 %v1783_v61, 16  ;;  %v1207_v20 = vshll.u32 %v1785_v4, 16  ;;  %v2058_v56 = vld [vmem:[%s2574_s28 + $0x68] ss:$16 sps:$4 sm:$0xff]  }
  0xcd   : > { %1867 = vmatpush3.bf16.msra.mxu1 %v2658_v43  ;;  %1862 = vmatprep.mubr.msk.bf16.mxu1 %vm450_vm2, %v1708_v46  ;;  %v1200_v43 = vrot.slane %v1198_v62, 4  ;;  %v1212_v22 = vshrl.u32 %v1786_v8, 16  ;;  %v1215_v23 = vshll.u32 %v1786_v8, 16  ;;  %v1190_v24 = vor.u32 %v1189_v6, %v1186_v5  ;;  %v2057_v46 = vld [vmem:[%s2574_s28 + $0x48] ss:$16 sps:$4 sm:$0xff]  }
  0xce   : > { %v1226_v26 = vshrl.u32 %v1788_v7, 16  ;;  %v1229_v28 = vshll.u32 %v1788_v7, 16  ;;  %v1167_v2 = vrot.slane %v1165_v16, 5  ;;  %v1163_v29 = vrot.slane %v1162_v18, 4  ;;  %v1799_v5 = vld [vmem:[#allocation7] ss:$0 sm:$0xff] }
  0xcf   : > { %v1204_v25 = vor.u32 %v1203_v11, %v1200_v43  ;;  %v1177_v30 = vrot.slane %v1176_v0, 4  ;;  %v1181_v31 = vrot.slane %v1179_v9, 5  ;;  %v1214_v33 = vrot.slane %v1212_v22, 4 }
  0xd0   : > { %1889 = vmatmul.mubr.msk.bf16.vlgmr.msra.gmra.mrb[0].mxu0 %vm450_vm2, %v2050_v51  ;;  %v1217_v34 = vrot.slane %v1215_v23, 5  ;;  %v1228_v35 = vrot.slane %v1226_v26, 4  ;;  %v1231_v36 = vrot.slane %v1229_v28, 5  ;;  %v1191_v37 = vrot.slane %v1190_v24, 4 }
  0xd1   : > { %1897 = vmatpush3.bf16.msra.mxu0 %v2678_v13  ;;  %1892 = vmatprep.mubr.msk.bf16.mxu0 %vm450_vm2, %v2052_v60  ;;  %v1790_v13 = vcombine.low %v1140_v14, %v1154_v15  ;;  %v1195_v38 = vrot.slane %v1193_v19, 5  ;;  %v1205_v39 = vrot.slane %v1204_v25, 4  ;;  %v1209_v41 = vrot.slane %v1207_v20, 5 }
  0xd2   : > { %v1168_v45 = vsel %vm2612_vm3, %v1163_v29, %v1167_v2  ;;  %v1221_v47 = vshll.u32 %v1787_v32, 16  ;;  %v1182_v48 = vsel %vm2612_vm3, %v1177_v30, %v1181_v31  ;;  %v1218_v49 = vor.u32 %v1217_v34, %v1214_v33 }
  0xd3   : > { %v1232_v50 = vor.u32 %v1231_v36, %v1228_v35  ;;  %v1235_v51 = vshll.u32 %v1789_v17, 16  ;;  %v1196_v52 = vsel %vm2612_vm3, %v1191_v37, %v1195_v38  ;;  %v1210_v40 = vsel %vm2612_vm3, %v1205_v39, %v1209_v41 }
  0xd4   : > { %1863 = vmatmul.mubr.msk.bf16.gmra.mrb[4].mxu1 %vm450_vm2, %v1709_v1  ;;  %v1791_v44 = vcombine.low %v1168_v45, %v1182_v48  ;;  %v1223_v53 = vrot.slane %v1221_v47, 5  ;;  %v1792_v54 = vcombine.low %v1196_v52, %v1210_v40  ;;  %v1219_v55 = vrot.slane %v1218_v49, 4 }
  0xd5   : > { %1868 = vmatprep.mubr.msk.bf16.mxu1 %vm450_vm2, %v2055_v12  ;;  %v1233_v10 = vrot.slane %v1232_v50, 4  ;;  %v1237_v21 = vrot.slane %v1235_v51, 5  ;;  %vm1360_vm4 = vcmask 261120  }
  0xd6   : > { %v1224_v57 = vsel %vm2612_vm3, %v1219_v55, %v1223_v53 }
  0xd7   : > { %v1238_v58 = vsel %vm2612_vm3, %v1233_v10, %v1237_v21 }
  0xd8   : > { %1893 = vmatmul.mubr.msk.bf16.gmra.mrb[4].mxu0 %vm450_vm2, %v2054_v3  ;;  %v1793_v59 = vcombine.low %v1224_v57, %v1238_v58 }
  0xd9   : > { %1898 = vmatprep.mubr.msk.bf16.mxu0 %vm450_vm2, %v1790_v13 }
  0xdc   : > { %1869 = vmatmul.mubr.msk.bf16.vlgmr.msra.gmra.mrb[0].mxu1 %vm450_vm2, %v2056_v42 }
  0xdd   : > { %1872 = vmatprep.mubr.msk.bf16.mxu1 %vm450_vm2, %v2057_v46 }
  0xe0   : > { %1899 = vmatmul.mubr.msk.bf16.vlgmr.msra.gmra.mrb[0].mxu0 %vm450_vm2, %v1791_v44 }
  0xe1   : > { %1902 = vmatprep.mubr.msk.bf16.mxu0 %vm450_vm2, %v1792_v54 }
  0xe4   : > { %1873 = vmatmul.mubr.msk.bf16.gmra.mrb[4].mxu1 %vm450_vm2, %v2058_v56 }
  0xe8   : > { %1903 = vmatmul.mubr.msk.bf16.gmra.mrb[4].mxu0 %vm450_vm2, %v1793_v59 }
 0x1af   : > { %v1870_v60 = vpop.f32.mrb[0].mxu1 }
 0x1b0   : > { %v715_v61 = vpop.f32.mrb[1].mxu1 }
 0x1b1   : > { %v1871_v62 = vpop.f32.mrb[2].mxu1 }
 0x1b2   : > { %v718_v63 = vpop.f32.mrb[3].mxu1 }
 0x1b3   : > { %v1900_v1 = vpop.f32.mrb[0].mxu0 }
 0x1b4   : > { %v1906_v4 = vadd.f32 %v1900_v1, %v1870_v60  ;;  %v1306_v6 = vpop.f32.mrb[1].mxu0 }
 0x1b5   : > { %v1907_v8 = vadd.f32 %v1306_v6, %v715_v61  ;;  %v1901_v16 = vpop.f32.mrb[2].mxu0 }
 0x1b6   : > { %v1908_v9 = vadd.f32 %v1901_v16, %v1871_v62  ;;  %v1309_v43 = vpop.f32.mrb[3].mxu0  ;;  %v1354_v18 = vadd.f32 %v1906_v4, %v1799_v5 }
 0x1b7   : > { %v1874_v11 = vpop.f32.mrb[4].mxu1  ;;  %v1352_v27 = vadd.f32 %v1907_v8, %v1799_v5  ;;  %v1909_v12 = vadd.f32 %v1309_v43, %v718_v63 }
 0x1b8   : > { %v731_v14 = vpop.f32.mrb[5].mxu1  ;;  %v1355_v20 = vadd.f32 %v1908_v9, %v1799_v5  ;;  %v1364_v28 = vsel %vm1360_vm4, %v1354_v18, 0.0 }
 0x1b9   : > { %v1875_v15 = vpop.f32.mrb[6].mxu1  ;;  %v1353_v0 = vadd.f32 %v1909_v12, %v1799_v5  ;;  %v1361_v19 = vsel %vm1360_vm4, %v1352_v27, 0.0 }
 0x1ba   : > { %v734_v7 = vpop.f32.mrb[7].mxu1  ;;  %v1366_v31 = vsel %vm1360_vm4, %v1355_v20, 0.0 }
 0x1bb   : > { %v1362_v22 = vsel %vm1360_vm4, %v1353_v0, 0.0  ;;  %v1904_v23 = vpop.f32.mrb[4].mxu0 }
 0x1bc   : > { %v1363_v24 = vadd.f32 %v1362_v22, %v1361_v19  ;;  %v1910_v25 = vadd.f32 %v1904_v23, %v1874_v11  ;;  %v1322_v26 = vpop.f32.mrb[5].mxu0 }
 0x1bd   : > { %v1911_v2 = vadd.f32 %v1322_v26, %v731_v14  ;;  %v1905_v3 = vpop.f32.mrb[6].mxu0 }
 0x1be   : > { %v1365_v13 = vadd.f32 %v1364_v28, %v1363_v24  ;;  %v1912_v29 = vadd.f32 %v1905_v3, %v1875_v15  ;;  %v1325_v30 = vpop.f32.mrb[7].mxu0  ;;  %v1358_v35 = vadd.f32 %v1910_v25, %v1799_v5 }
 0x1bf   : > { %v1356_v32 = vadd.f32 %v1911_v2, %v1799_v5  ;;  %v1913_v33 = vadd.f32 %v1325_v30, %v734_v7 }
 0x1c0   : > { %v1367_v34 = vadd.f32 %v1366_v31, %v1365_v13  ;;  %v1359_v39 = vadd.f32 %v1912_v29, %v1799_v5  ;;  %v1372_v42 = vsel %vm1360_vm4, %v1358_v35, 0.0  ;;  %v1800_v29 = vld [vmem:[#allocation8] ss:$0 sm:$0xff] }
 0x1c1   : > { %v1368_v36 = vsel %vm1360_vm4, %v1356_v32, 0.0  ;;  %v1357_v37 = vadd.f32 %v1913_v33, %v1799_v5 }
 0x1c2   : > { %v1369_v38 = vadd.f32 %v1368_v36, %v1367_v34  ;;  %v1374_v46 = vsel %vm1360_vm4, %v1359_v39, 0.0  ;;  %v1801_v36 = vld [vmem:[#allocation10] ss:$0 sm:$0xff] }
 0x1c3   : > { %v1370_v41 = vsel %vm1360_vm4, %v1357_v37, 0.0 }
 0x1c4   : > { %v1371_v17 = vadd.f32 %v1370_v41, %v1369_v38 }
 0x1c6   : > { %v1373_v45 = vadd.f32 %v1372_v42, %v1371_v17 }
 0x1c8   : > { %v1375_v47 = vadd.f32 %v1374_v46, %v1373_v45 }
 0x1ca   : > { %v1376_v48 = vrot.slane %v1375_v47, 4 }
 0x1cc   : > { %v1377_v49 = vadd.f32 %v1376_v48, %v1375_v47 }
 0x1ce   : > { %v1378_v50 = vrot.slane %v1377_v49, 2 }
 0x1d0   : > { %v1379_v51 = vadd.f32 %v1378_v50, %v1377_v49 }
 0x1d2   : > { %v1380_v52 = vrot.slane %v1379_v51, 1 }
 0x1d4   : > { %v1381_v40 = vadd.f32 %v1380_v52, %v1379_v51 }
 0x1d6   : > { %v1383_v44 = vmul.f32 0.015625, %v1381_v40 }
 0x1d8   : > { %v1384_v53 = vsub.f32 %v1352_v27, %v1383_v44  ;;  %v1385_v54 = vsub.f32 %v1353_v0, %v1383_v44  ;;  %v1386_v55 = vsub.f32 %v1354_v18, %v1383_v44  ;;  %v1387_v10 = vsub.f32 %v1355_v20, %v1383_v44 }
 0x1d9   : > { %v1388_v21 = vsub.f32 %v1356_v32, %v1383_v44  ;;  %v1389_v56 = vsub.f32 %v1357_v37, %v1383_v44  ;;  %v1390_v57 = vsub.f32 %v1358_v35, %v1383_v44  ;;  %v1391_v58 = vsub.f32 %v1359_v39, %v1383_v44 }
 0x1da   : > { %v1392_v59 = vmul.f32 %v1384_v53, %v1384_v53  ;;  %v1393_v60 = vmul.f32 %v1385_v54, %v1385_v54  ;;  %v1394_v61 = vmul.f32 %v1386_v55, %v1386_v55  ;;  %v1395_v62 = vmul.f32 %v1387_v10, %v1387_v10 }
 0x1db   : > { %v1396_v5 = vmul.f32 %v1388_v21, %v1388_v21  ;;  %v1397_v16 = vmul.f32 %v1389_v56, %v1389_v56  ;;  %v1398_v11 = vmul.f32 %v1390_v57, %v1390_v57  ;;  %v1399_v14 = vmul.f32 %v1391_v58, %v1391_v58 }
 0x1dc   : > { %v1400_v63 = vsel %vm1360_vm4, %v1392_v59, 0.0  ;;  %v1401_v1 = vsel %vm1360_vm4, %v1393_v60, 0.0  ;;  %v1403_v6 = vsel %vm1360_vm4, %v1394_v61, 0.0  ;;  %v1405_v9 = vsel %vm1360_vm4, %v1395_v62, 0.0 }
 0x1dd   : > { %v1402_v4 = vadd.f32 %v1401_v1, %v1400_v63  ;;  %v1407_v27 = vsel %vm1360_vm4, %v1396_v5, 0.0  ;;  %v1409_v15 = vsel %vm1360_vm4, %v1397_v16, 0.0  ;;  %v1411_v0 = vsel %vm1360_vm4, %v1398_v11, 0.0 }
 0x1de   : > { %v1413_v19 = vsel %vm1360_vm4, %v1399_v14, 0.0 }
 0x1df   : > { %v1404_v8 = vadd.f32 %v1403_v6, %v1402_v4 }
 0x1e1   : > { %v1406_v43 = vadd.f32 %v1405_v9, %v1404_v8 }
 0x1e3   : > { %v1408_v12 = vadd.f32 %v1407_v27, %v1406_v43 }
 0x1e5   : > { %v1410_v18 = vadd.f32 %v1409_v15, %v1408_v12 }
 0x1e7   : > { %v1412_v7 = vadd.f32 %v1411_v0, %v1410_v18 }
 0x1e9   : > { %v1414_v20 = vadd.f32 %v1413_v19, %v1412_v7 }
 0x1eb   : > { %v1415_v22 = vrot.slane %v1414_v20, 4 }
 0x1ed   : > { %v1416_v23 = vadd.f32 %v1415_v22, %v1414_v20 }
 0x1ef   : > { %v1417_v24 = vrot.slane %v1416_v23, 2 }
 0x1f1   : > { %v1418_v25 = vadd.f32 %v1417_v24, %v1416_v23 }
 0x1f3   : > { %v1419_v26 = vrot.slane %v1418_v25, 1 }
 0x1f5   : > { %v1420_v28 = vadd.f32 %v1419_v26, %v1418_v25 }
 0x1f7   : > { %v1421_v2 = vmul.f32 0.015625, %v1420_v28 }
 0x1f9   : > { %v1422_v3 = vadd.f32 1e-05, %v1421_v2 }
 0x1fb   : > { %2059 = vrsqrt.f32 %v1422_v3 }
 0x205   : > { %v2060_v13 = vpop.eup %2059 }
 0x206   : > { %v1425_v30 = vmul.f32 %v2060_v13, %v1385_v54  ;;  %v1427_v31 = vmul.f32 %v2060_v13, %v1387_v10  ;;  %v1428_v32 = vmul.f32 %v2060_v13, %v1388_v21  ;;  %v1429_v33 = vmul.f32 %v2060_v13, %v1389_v56 }
 0x207   : > { %v1430_v34 = vmul.f32 %v2060_v13, %v1390_v57  ;;  %v1431_v35 = vmul.f32 %v2060_v13, %v1391_v58  ;;  %v1426_v37 = vmul.f32 %v2060_v13, %v1386_v55  ;;  %v1424_v38 = vmul.f32 %v2060_v13, %v1384_v53 }
 0x208   : > { %v1442_v39 = vmul.f32 %v1800_v29, %v1427_v31  ;;  %v1440_v41 = vmul.f32 %v1800_v29, %v1425_v30  ;;  %v1444_v46 = vmul.f32 %v1800_v29, %v1429_v33  ;;  %v1443_v48 = vmul.f32 %v1800_v29, %v1428_v32 }
 0x209   : > { %v1441_v17 = vmul.f32 %v1800_v29, %v1426_v37  ;;  %v1439_v42 = vmul.f32 %v1800_v29, %v1424_v38  ;;  %v1446_v52 = vmul.f32 %v1800_v29, %v1431_v35  ;;  %v1445_v53 = vmul.f32 %v1800_v29, %v1430_v34 }
 0x20a   : > { %v2794_v45 = vadd.f32 %v1801_v36, %v1442_v39  ;;  %v2800_v50 = vadd.f32 %v1801_v36, %v1440_v41  ;;  %v2803_v40 = vadd.f32 %v1801_v36, %v1444_v46  ;;  %v2806_v54 = vadd.f32 %v1801_v36, %v1443_v48 }
 0x20b   : > { %v2796_v47 = vadd.f32 %v1801_v36, %v1441_v17  ;;  %v2798_v49 = vadd.f32 %v1801_v36, %v1439_v42  ;;  %v2810_v21 = vadd.f32 %v1801_v36, %v1446_v52  ;;  %v2813_v57 = vadd.f32 %v1801_v36, %v1445_v53 }
 0x20c   : > { %v1805_v51 = vmul.f32 -1.442695, %v2794_v45  ;;  %v1803_v10 = vmul.f32 -1.442695, %v2800_v50  ;;  %v1807_v56 = vmul.f32 -1.442695, %v2803_v40 }
 0x20d   : > { %v1804_v44 = vmul.f32 -1.442695, %v2796_v47  ;;  %v1802_v55 = vmul.f32 -1.442695, %v2798_v49  ;;  %v1806_v58 = vmul.f32 -1.442695, %v2806_v54 }
 0x20e   : > { %2061 = vpow2.f32 %v1805_v51  ;;  %v1809_v59 = vmul.f32 -1.442695, %v2810_v21  ;;  %v1808_v60 = vmul.f32 -1.442695, %v2813_v57 }
 0x20f   : > { %2063 = vpow2.f32 %v1804_v44 }
 0x210   : > { %2065 = vpow2.f32 %v1802_v55 }
 0x211   : > { %2067 = vpow2.f32 %v1803_v10 }
 0x212   : > { %2069 = vpow2.f32 %v1807_v56 }
 0x213   : > { %2071 = vpow2.f32 %v1806_v58 }
 0x214   : > { %2073 = vpow2.f32 %v1809_v59 }
 0x215   : > { %2075 = vpow2.f32 %v1808_v60 }
 0x218   : > { %v2062_v61 = vpop.eup %2061 }
 0x219   : > { %v2064_v62 = vpop.eup %2063  ;;  %v1489_v6 = vadd.f32 1.0, %v2062_v61 }
 0x21a   : > { %v2066_v63 = vpop.eup %2065  ;;  %v1488_v1 = vadd.f32 1.0, %v2064_v62 }
 0x21b   : > { %v2068_v4 = vpop.eup %2067  ;;  %v1486_v5 = vadd.f32 1.0, %v2066_v63 }
 0x21c   : > { %2077 = vrcp.f32 %v1488_v1  ;;  %v2070_v8 = vpop.eup %2069  ;;  %v1487_v16 = vadd.f32 1.0, %v2068_v4 }
 0x21d   : > { %2079 = vrcp.f32 %v1486_v5  ;;  %v2072_v9 = vpop.eup %2071  ;;  %v1491_v43 = vadd.f32 1.0, %v2070_v8 }
 0x21e   : > { %2081 = vrcp.f32 %v1489_v6  ;;  %v2074_v11 = vpop.eup %2073  ;;  %v1490_v27 = vadd.f32 1.0, %v2072_v9 }
 0x21f   : > { %2083 = vrcp.f32 %v1487_v16  ;;  %v2076_v12 = vpop.eup %2075  ;;  %v1493_v14 = vadd.f32 1.0, %v2074_v11 }
 0x220   : > { %2085 = vrcp.f32 %v1491_v43  ;;  %v1492_v15 = vadd.f32 1.0, %v2076_v12 }
 0x221   : > { %2087 = vrcp.f32 %v1490_v27 }
 0x222   : > { %2089 = vrcp.f32 %v1493_v14 }
 0x223   : > { %2091 = vrcp.f32 %v1492_v15 }
 0x226   : > { %v2078_v18 = vpop.eup %2077 }
 0x227   : > { %v2080_v0 = vpop.eup %2079  ;;  %1522 = vrot.lane.b32.xlu1 %v2078_v18, %s2318_s24 }
 0x228   : > { %1518 = vrot.lane.b32.xlu0 %v2080_v0, %s2318_s24  ;;  %v2082_v7 = vpop.eup %2081 }
 0x229   : > { %v2084_v19 = vpop.eup %2083 }
 0x22a   : > { %v2086_v20 = vpop.eup %2085 }
 0x22b   : > { %1524 = vrot.lane.b32.xlu1 %v2082_v7, %s2318_s24  ;;  %v2088_v22 = vpop.eup %2087 }
 0x22c   : > { %1520 = vrot.lane.b32.xlu0 %v2084_v19, %s2318_s24  ;;  %v2090_v23 = vpop.eup %2089 }
 0x22d   : > { %v2092_v24 = vpop.eup %2091 }
 0x22f   : > { %1528 = vrot.lane.b32.xlu1 %v2086_v20, %s2318_s24 }
 0x230   : > { %1526 = vrot.lane.b32.xlu0 %v2088_v22, %s2318_s24 }
 0x233   : > { %1532 = vrot.lane.b32.xlu1 %v2090_v23, %s2318_s24 }
 0x234   : > { %1530 = vrot.lane.b32.xlu0 %v2092_v24, %s2318_s24 }
 0x299   : > { %v1523_v25 = vpop.permute.xlu1 %1522 }
 0x29a   : > { %v1544_v26 = vmul.f32 %v1523_v25, %v2796_v47  ;;  %v1519_v28 = vpop.permute.xlu0 %1518 }
 0x29b   : > { %v1542_v2 = vmul.f32 %v1519_v28, %v2798_v49 }
 0x29c   : > { %1552 = vst.msk [vmem:[%s294_s27 + $0x10] sm:$0xff] %vm450_vm2, %v1544_v26 }
 0x29d   : > { %1550 = vst.msk [vmem:[%s294_s27] sm:$0xff] %vm450_vm2, %v1542_v2  ;;  %v1525_v3 = vpop.permute.xlu1 %1524 }
 0x29e   : > { %v1545_v13 = vmul.f32 %v1525_v3, %v2794_v45  ;;  %v1521_v29 = vpop.permute.xlu0 %1520 }
 0x29f   : > { %v1543_v30 = vmul.f32 %v1521_v29, %v2800_v50 }
 0x2a0   : > { %1553 = vst.msk [vmem:[%s294_s27 + $0x18] sm:$0xff] %vm450_vm2, %v1545_v13 }
 0x2a1   : > { %1551 = vst.msk [vmem:[%s294_s27 + $0x8] sm:$0xff] %vm450_vm2, %v1543_v30  ;;  %v1529_v31 = vpop.permute.xlu1 %1528 }
 0x2a2   : > { %v1547_v32 = vmul.f32 %v1529_v31, %v2803_v40  ;;  %v1527_v33 = vpop.permute.xlu0 %1526 }
 0x2a3   : > { %v1546_v34 = vmul.f32 %v1527_v33, %v2806_v54 }
 0x2a4   : > { %1555 = vst.msk [vmem:[%s294_s27 + $0x28] sm:$0xff] %vm450_vm2, %v1547_v32 }
 0x2a5   : > { %1554 = vst.msk [vmem:[%s294_s27 + $0x20] sm:$0xff] %vm450_vm2, %v1546_v34  ;;  %v1533_v35 = vpop.permute.xlu1 %1532 }
 0x2a6   : > { %v1549_v36 = vmul.f32 %v1533_v35, %v2810_v21  ;;  %v1531_v37 = vpop.permute.xlu0 %1530 }
 0x2a7   : > { %v1548_v38 = vmul.f32 %v1531_v37, %v2813_v57 }
 0x2a8   : > { %1557 = vst.msk [vmem:[%s294_s27 + $0x38] sm:$0xff] %vm450_vm2, %v1549_v36 }
 0x2a9   : > { %1556 = vst.msk [vmem:[%s294_s27 + $0x30] sm:$0xff] %vm450_vm2, %v1548_v38 }
 0x2aa   : > { %2248 = shalt.err (!%p2245_p13)
}
 0x2ab   : > { %s2249_s9 = scalar_lea.hbm %s2836_s12, 1024  ;;  %s2253_s24 = scalar_lea.hbm %s2890_s5, 2048 }
 0x2ac   : > { %p2250_p9 = scmp.ne.s32.totalorder %s2836_s12, %s2249_s9  ;;  %p2254_p6 = scmp.lt.u32.totalorder %s2836_s12, %s2890_s5 }
 0x2ad   : > { %p2255_p4 = scmp.lt.u32.totalorder %s2253_s24, %s2249_s9  ;;  %p2257_p3 = scmp.lt.u32.totalorder %s2249_s9, %s2836_s12 }
 0x2ae   : > { %p2251_p0 = pnand %p2250_p9, %p2515_p10 }
 0x2af   : > { %p2256_p8 = por %p2255_p4, %p2254_p6 }
 0x2b0   : > { %p2252_p11 = pneg %p2251_p0 }
 0x2b1   : > { %p2258_p5 = por %p2257_p3, %p2256_p8 }
 0x2b3   : > { %p2259_p7 = pnand %p2258_p5, %p2252_p11 }
 0x2b5   : > { %2262 = shalt.err (!%p2259_p7)
}
 0x2b6   : > { %s2320_s15 = smov 128   ;;  %s2321_s17 = smov 8  }
 0x2b7   : > { %1967 = dma.vmem_to_hbm [thread:$0]  (%p2515_p10), %s2838_s8, 1024, %s2836_s12, %s1559_s22, %s2320_s15, %s2320_s15, %s2321_s17  }
 0x2b8 PF: > { %s1587_s30 = sand.u32 1, %s2297_s18   ;;  %p2912_p12 = scmp.ne.s32.totalorder %s2896_s25, 0 }
 0x2b9   : > { %p2913_p1 = scmp.ge.s32.totalorder %s2309_s21, 2  ;;  %s1588_s13 = scalar_lea.sflag [#allocation4], %s1587_s30 }
 0x2bb   : > { %p1987_p2 = pnand %p2913_p1, %p2912_p12 }
 0x2bd   : > { %2292 = dma.done.wait (!%p1987_p2), %s1588_s13, 1024  }
 0x2be   : > { %2294 = vsyncadd (!%p1987_p2), %s1588_s13, 4294966272  ;;  %p20_p13 = scmp.ge.s32.totalorder %s2505_s14, 4   ;;  %s2914_s18 = smov %s2301_s19 }
 0x2bf   : > { %s2915_s19 = smov %s2305_s20  ;;  %s2916_s20 = smov %s2521_s11 }
 0x2c0   : > { %s2917_s21 = smov %s2505_s14  ;;  %22 = sbr.rel (!%p20_p13) target bundleno = 7 (0x7), region = 108 }
 0x2c7   :  { %1593 = vsyncpa [#allocation3], 1 }
 0x2c8   :  { %1595 = vsyncpa [#allocation3 + $0x1], 1 }
 0x2c9   :  { %1596 = vsyncpa [#allocation6], 1 }
 0x2ca   :  { %1597 = vsyncpa [#allocation9], 1 }
 0x2cb   :  { %1598 = vsyncpa [#allocation4], 1 }
 0x2cc   :  { %1600 = vsyncpa [#allocation4 + $0x1], 1 }

</bundles_post_ra>
